<compile_context>
chip_gen: v7x
topology: tpu7x:2x2x1
jax: 0.10.0
libtpu: 0.0.40
codegen_flags: <defaults>
</compile_context>

<pallas_src>
import functools

import jax
import jax.numpy as jnp
from jax.experimental import pallas as pl
from jax.experimental.pallas import tpu as pltpu


def _round_up(x, m):
    return (x + m - 1) // m * m


def _pick_ti(I, H, dt_bytes, tm, vmem_budget):
    """Largest multiple-of-128 divisor of I whose double-buffered weight tiles
    fit the VMEM budget; falls back to the whole intermediate dim."""
    # Fixed VMEM: x tile + out tile (double-buffered each) + f32 accumulator.
    fixed = 2 * (2 * tm * H * dt_bytes) + tm * H * 4
    avail = max(vmem_budget - fixed, 0)
    t = (I // 128) * 128
    while t >= 128:
        # per-step weight bytes: fused gate|up (H, 2*ti) + down (ti, H), x2 buffers
        if I % t == 0 and 2 * (3 * H * t) * dt_bytes <= avail:
            return t
        t -= 128
    return I  # tiny / oddly-sized intermediate dim: one full block


def _ffn_kernel(x_ref, wgu_ref, wd_ref, o_ref, acc_ref, *, ti):
    # x_ref:   (tm, H)       token tile (re-used across the I axis)
    # wgu_ref: (H, 2*ti)     columns [gate_j | up_j] of the fused gate/up weight
    # wd_ref:  (ti, H)       rows j of the down projection
    # o_ref:   (tm, H)       output tile
    # acc_ref: (tm, H) f32   down-projection accumulator (VMEM scratch)
    j = pl.program_id(1)

    x = x_ref[...]
    # Fused gate+up projection: one MXU pass per intermediate tile.
    gu = jnp.dot(x, wgu_ref[...], preferred_element_type=jnp.float32)  # (tm, 2*ti)
    g = gu[:, :ti]
    u = gu[:, ti:]
    # SiLU(g) * u ; sigmoid = exp (EUP) + approx reciprocal (EUP slot, ~free).
    sig = pl.reciprocal(1.0 + jnp.exp(-g), approx=True)
    h = (g * sig) * u
    # Partial down projection for this intermediate tile, accumulated in f32.
    partial = jnp.dot(h.astype(wd_ref.dtype), wd_ref[...],
                      preferred_element_type=jnp.float32)

    @pl.when(j == 0)
    def _():
        acc_ref[...] = partial          # first step: no zero-fill pass needed

    @pl.when(j > 0)
    def _():
        acc_ref[...] += partial

    @pl.when(j == pl.num_programs(1) - 1)
    def _():
        o_ref[...] = acc_ref[...].astype(o_ref.dtype)
    # TODO(synk): dropout is p=0.0 in the default config -> identity; a nonzero
    # rate would use pltpu.prng_seed + pltpu.stateful_bernoulli here.


@functools.partial(jax.jit, static_argnames=("tm", "ti"))
def feed_forward(x, wg_t, wu_t, wd_t, *, tm=256, ti=None):
    """SwiGLU FFN: down_proj( silu(x @ wg_t) * (x @ wu_t) ).

    x:    (B, S, H)
    wg_t: (H, I)   gate_proj weight (transposed vs nn.Linear)
    wu_t: (H, I)   up_proj   weight (transposed vs nn.Linear)
    wd_t: (I, H)   down_proj weight (transposed vs nn.Linear)
    Returns (B, S, H) in x.dtype.  Accumulation is f32; bf16 inputs/weights
    take the peak-MXU bf16 path.
    """
    B, S, H = x.shape
    I = wg_t.shape[1]
    M = B * S
    dt_bytes = jnp.dtype(x.dtype).itemsize

    # Token row tile: MXU-saturating but never larger than the (padded) token
    # count; must be a multiple of 8 (sublane) unless it spans all rows.
    tm_eff = min(tm, _round_up(M, 8))
    M_pad = _round_up(M, tm_eff)

    # Intermediate tile: lane-aligned, divides I, sized to a conservative VMEM
    # budget (leave headroom below the 64 MiB limit for the pipeline buffers).
    if ti is None:
        ti = _pick_ti(I, H, dt_bytes, tm_eff, vmem_budget=40 * 1024 * 1024)
    assert I % ti == 0
    n_i = I // ti

    x2 = x.reshape(M, H)
    if M_pad != M:
        x2 = jnp.pad(x2, ((0, M_pad - M), (0, 0)))

    # Fuse gate+up into one (H, 2*I) weight whose j-th block of 2*ti columns is
    # [gate tile j | up tile j] -> one BlockSpec / one DMA / one dot per tile.
    # (In a real model this interleave is done once at weight-load time.)
    wgu = jnp.concatenate(
        [wg_t.reshape(H, n_i, ti), wu_t.reshape(H, n_i, ti)], axis=2
    ).reshape(H, 2 * I)

    cost = pl.CostEstimate(
        flops=int(6 * M * H * I),            # 2*M*H*(2I) + 2*M*I*H
        transcendentals=int(M * I),          # exp in SiLU
        bytes_accessed=int((2 * M * H + 3 * H * I) * dt_bytes),
    )

    out = pl.pallas_call(
        functools.partial(_ffn_kernel, ti=ti),
        out_shape=jax.ShapeDtypeStruct((M_pad, H), x.dtype),
        grid_spec=pltpu.PrefetchScalarGridSpec(
            num_scalar_prefetch=0,
            grid=(M_pad // tm_eff, n_i),     # reduction (I) axis last
            in_specs=[
                pl.BlockSpec((tm_eff, H), lambda i, j: (i, 0)),   # token tile
                pl.BlockSpec((H, 2 * ti), lambda i, j: (0, j)),   # fused gate|up
                pl.BlockSpec((ti, H), lambda i, j: (j, 0)),       # down proj
            ],
            out_specs=pl.BlockSpec((tm_eff, H), lambda i, j: (i, 0)),
            scratch_shapes=[pltpu.VMEM((tm_eff, H), jnp.float32)],
        ),
        compiler_params=pltpu.CompilerParams(
            dimension_semantics=("parallel", "arbitrary"),
            vmem_limit_bytes=64 * 1024 * 1024,
        ),
        cost_estimate=cost,
    )(x2, wgu, wd_t)

    if M_pad != M:
        out = out[:M]
    return out.reshape(B, S, H)


def _ref_ffn(x, wg_t, wu_t, wd_t):
    g = x @ wg_t
    u = x @ wu_t
    h = (g * jax.nn.sigmoid(g)) * u
    return h @ wd_t


if __name__ == "__main__":
    # Small config consistent with MiniMindConfig: hidden_size=128 ->
    # intermediate_size = 64 * ceil(int(128*8/3)/64) = 384
    hidden_size = 128
    intermediate_size = 64 * ((int(hidden_size * 8 / 3) + 64 - 1) // 64)  # 384

    B, S = 2, 8
    key = jax.random.PRNGKey(0)
    kx, kg, ku, kd = jax.random.split(key, 4)

    x = jax.random.normal(kx, (B, S, hidden_size), dtype=jnp.float32)
    # nn.Linear weights are (out, in); store transposed so kernel does x @ W.
    wg_t = (jax.random.normal(kg, (intermediate_size, hidden_size), jnp.float32)
            * 0.02).T            # (H, I)
    wu_t = (jax.random.normal(ku, (intermediate_size, hidden_size), jnp.float32)
            * 0.02).T            # (H, I)
    wd_t = (jax.random.normal(kd, (hidden_size, intermediate_size), jnp.float32)
            * 0.02).T            # (I, H)

    # --- f32 path ---
    y = jax.block_until_ready(feed_forward(x, wg_t, wu_t, wd_t))
    y_ref = _ref_ffn(x, wg_t, wu_t, wd_t)
    assert y.shape == (B, S, hidden_size)
    assert jnp.allclose(y, y_ref, atol=1e-3, rtol=1e-3), "f32 mismatch vs reference"

    # --- bf16 weights/activations with f32 accumulation (peak MXU path) ---
    xb, wgb, wub, wdb = (a.astype(jnp.bfloat16) for a in (x, wg_t, wu_t, wd_t))
    yb = jax.block_until_ready(feed_forward(xb, wgb, wub, wdb))
    yb_ref = _ref_ffn(*(a.astype(jnp.float32) for a in (xb, wgb, wub, wdb)))
    assert jnp.allclose(yb.astype(jnp.float32), yb_ref, atol=5e-3, rtol=5e-2), \
        "bf16 mismatch vs reference"

    print("KERNEL_OK")
</pallas_src>

<mosaic_0001>
module attributes {stable_mosaic.version = 11 : i64} {
  func.func @_ffn_kernel(%arg0: i32, %arg1: i32, %arg2: memref<16x128xf32, #tpu.memory_space<vmem>>, %arg3: memref<128x768xf32, #tpu.memory_space<vmem>>, %arg4: memref<384x128xf32, #tpu.memory_space<vmem>>, %arg5: memref<16x128xf32, #tpu.memory_space<vmem>>, %arg6: memref<16x128xf32, #tpu.memory_space<vmem>>) attributes {dimension_semantics = [#tpu.dimension_semantics<parallel>, #tpu.dimension_semantics<arbitrary>], iteration_bounds = array<i64: 1, 1>, scalar_prefetch = 0 : i64, scratch_operands = 1 : i64, tpu.core_type = #tpu.core_type<tc>, window_params = [{transform_indices = @transform_0, window_bounds = array<i64: 16, 128>}, {transform_indices = @transform_1, window_bounds = array<i64: 128, 768>}, {transform_indices = @transform_2, window_bounds = array<i64: 384, 128>}, {transform_indices = @transform_3, window_bounds = array<i64: 16, 128>}]} {
    %c0 = arith.constant 0 : index
    %c0_0 = arith.constant 0 : index
    %0 = vector.load %arg2[%c0, %c0_0] : memref<16x128xf32, #tpu.memory_space<vmem>>, vector<16x128xf32>
    %c0_1 = arith.constant 0 : index
    %c0_2 = arith.constant 0 : index
    %1 = vector.load %arg3[%c0_1, %c0_2] : memref<128x768xf32, #tpu.memory_space<vmem>>, vector<128x768xf32>
    %cst = arith.constant dense<0.000000e+00> : vector<16x768xf32>
    %2 = tpu.matmul %0, %1, %cst {dimension_numbers = #tpu.dot_dimension_numbers<[1], [0], [0], [1], [0, 0, 1, 1], [], []>} : vector<16x128xf32>, vector<128x768xf32>, vector<16x768xf32> -> vector<16x768xf32>
    %3 = vector.extract_strided_slice %2 {offsets = [0, 0], sizes = [16, 384], strides = [1, 1]} : vector<16x768xf32> to vector<16x384xf32>
    %4 = vector.extract_strided_slice %2 {offsets = [0, 384], sizes = [16, 384], strides = [1, 1]} : vector<16x768xf32> to vector<16x384xf32>
    %cst_3 = arith.constant 0.000000e+00 : f32
    %5 = vector.broadcast %cst_3 : f32 to vector<16x384xf32>
    %6 = arith.subf %5, %3 : vector<16x384xf32>
    %7 = math.exp %6 : vector<16x384xf32>
    %cst_4 = arith.constant 1.000000e+00 : f32
    %8 = vector.broadcast %cst_4 : f32 to vector<16x384xf32>
    %9 = arith.addf %8, %7 : vector<16x384xf32>
    %10 = tpu.reciprocal %9 {approx = true} : vector<16x384xf32> -> vector<16x384xf32>
    %11 = arith.mulf %3, %10 : vector<16x384xf32>
    %12 = arith.mulf %11, %4 : vector<16x384xf32>
    %c0_5 = arith.constant 0 : index
    %c0_6 = arith.constant 0 : index
    %13 = vector.load %arg4[%c0_5, %c0_6] : memref<384x128xf32, #tpu.memory_space<vmem>>, vector<384x128xf32>
    %cst_7 = arith.constant dense<0.000000e+00> : vector<16x128xf32>
    %14 = tpu.matmul %12, %13, %cst_7 {dimension_numbers = #tpu.dot_dimension_numbers<[1], [0], [0], [1], [0, 0, 1, 1], [], []>} : vector<16x384xf32>, vector<384x128xf32>, vector<16x128xf32> -> vector<16x128xf32>
    %c0_i32 = arith.constant 0 : i32
    %15 = arith.cmpi eq, %arg1, %c0_i32 : i32
    %16 = arith.extui %15 : i1 to i32
    %c0_i32_8 = arith.constant 0 : i32
    %17 = arith.cmpi ne, %16, %c0_i32_8 : i32
    scf.if %17 {
      %c0_13 = arith.constant 0 : index
      %c0_14 = arith.constant 0 : index
      %24 = vector.load %arg6[%c0_13, %c0_14] : memref<16x128xf32, #tpu.memory_space<vmem>>, vector<16x128xf32>
      tpu.vector_store %arg6[%c0_13, %c0_14], %14 {strides = array<i32>} : memref<16x128xf32, #tpu.memory_space<vmem>>, vector<16x128xf32>,
    } else {
    }
    %c0_i32_9 = arith.constant 0 : i32
    %18 = arith.cmpi sgt, %arg1, %c0_i32_9 : i32
    %19 = arith.extui %18 : i1 to i32
    %c0_i32_10 = arith.constant 0 : i32
    %20 = arith.cmpi ne, %19, %c0_i32_10 : i32
    scf.if %20 {
      %c0_13 = arith.constant 0 : index
      %c0_14 = arith.constant 0 : index
      %24 = vector.load %arg6[%c0_13, %c0_14] : memref<16x128xf32, #tpu.memory_space<vmem>>, vector<16x128xf32>
      %25 = arith.addf %24, %14 : vector<16x128xf32>
      %c0_15 = arith.constant 0 : index
      %c0_16 = arith.constant 0 : index
      %26 = vector.load %arg6[%c0_15, %c0_16] : memref<16x128xf32, #tpu.memory_space<vmem>>, vector<16x128xf32>
      tpu.vector_store %arg6[%c0_15, %c0_16], %25 {strides = array<i32>} : memref<16x128xf32, #tpu.memory_space<vmem>>, vector<16x128xf32>,
    } else {
    }
    %c0_i32_11 = arith.constant 0 : i32
    %21 = arith.cmpi eq, %arg1, %c0_i32_11 : i32
    %22 = arith.extui %21 : i1 to i32
    %c0_i32_12 = arith.constant 0 : i32
    %23 = arith.cmpi ne, %22, %c0_i32_12 : i32
    scf.if %23 {
      %c0_13 = arith.constant 0 : index
      %c0_14 = arith.constant 0 : index
      %24 = vector.load %arg6[%c0_13, %c0_14] : memref<16x128xf32, #tpu.memory_space<vmem>>, vector<16x128xf32>
      %c0_15 = arith.constant 0 : index
      %c0_16 = arith.constant 0 : index
      %25 = vector.load %arg5[%c0_15, %c0_16] : memref<16x128xf32, #tpu.memory_space<vmem>>, vector<16x128xf32>
      tpu.vector_store %arg5[%c0_15, %c0_16], %24 {strides = array<i32>} : memref<16x128xf32, #tpu.memory_space<vmem>>, vector<16x128xf32>,
    } else {
    }
    return
  }
  func.func @transform_0(%arg0: i32, %arg1: i32) -> (i32, i32) {
    %c0_i32 = arith.constant 0 : i32
    %c0_i32_0 = arith.constant 0 : i32
    return %arg0, %c0_i32 : i32, i32
  }
  func.func @transform_1(%arg0: i32, %arg1: i32) -> (i32, i32) {
    %c0_i32 = arith.constant 0 : i32
    %c0_i32_0 = arith.constant 0 : i32
    return %c0_i32, %arg1 : i32, i32
  }
  func.func @transform_2(%arg0: i32, %arg1: i32) -> (i32, i32) {
    %c0_i32 = arith.constant 0 : i32
    %c0_i32_0 = arith.constant 0 : i32
    return %arg1, %c0_i32 : i32, i32
  }
  func.func @transform_3(%arg0: i32, %arg1: i32) -> (i32, i32) {
    %c0_i32 = arith.constant 0 : i32
    %c0_i32_0 = arith.constant 0 : i32
    return %arg0, %c0_i32 : i32, i32
  }
}

</mosaic_0001>

<bundles_post_ra>
// kernel: feed_forward.1
= control target key start
LH: loop header
LB: loop body
LE: loop exit
PB: predicated region body
PF: predicated region fallthrough
CT: control target
= control target key end

     0   :  { %8 = vsyncpa [#allocation4], 0  ;;  %s1141_s0 = inlined_call_operand.hbm [shape: f32[16,128], index: 0, kind: input, shape index: {}]   ;;  %s1142_s1 = inlined_call_operand.hbm [shape: f32[128,768], index: 1, kind: input, shape index: {}]   ;;  %s1143_s2 = inlined_call_operand.hbm [shape: f32[384,128], index: 2, kind: input, shape index: {}]   ;;  %s1144_s3 = inlined_call_operand.hbm [shape: f32[16,128], index: 3, kind: output, shape index: {}]  }
   0x1   :  { %9 = vsyncpa [#allocation7], 0 }
   0x2   :  { %10 = vsyncpa [#allocation5], 0  ;;  %s1044_s12 = smov [#allocation6]   ;;  %s950_s16 = scalar_lea.hbm %s1142_s1, 12288 }
   0x3   :  { %s28_s13 = sshll.u32 %s1044_s12, 4  ;;  %p951_p0 = scmp.ne.s32.totalorder %s1142_s1, %s950_s16  ;;  %s29_s13 = int_to_ptr.vmem [resolvable:$true] %s28_s13 }
   0x4   :  { %p954_p1 = scmp.lt.u32.totalorder %s950_s16, %s1142_s1 }
   0x6   :  { %p956_p2 = pnand %p954_p1, %p951_p0 }
   0x8   :  { %959 = shalt.err (!%p956_p2)
}
   0x9   :  { %s960_s21 = scalar_lea.vmem %s29_s13, 12288  ;;  %p965_p4 = scmp.lt.s32.totalorder %s29_s13, %s29_s13 }
   0xa   :  { %p961_p3 = scmp.ne.s32.totalorder %s29_s13, %s960_s21  ;;  %p966_p5 = scmp.lt.s32.totalorder %s960_s21, %s960_s21 }
   0xc   :  { %p967_p6 = por %p966_p5, %p965_p4 }
   0xe   :  { %p968_p7 = pnand %p967_p6, %p961_p3 }
  0x10   :  { %971 = shalt.err (!%p968_p7)
}
  0x11   :  { %s1045_s22 = smov 768   ;;  %s1046_s23 = smov 48  }
  0x12   :  { %34 = dma.hbm_to_vmem [thread:$0]  %s1142_s1, 12288, %s29_s13, [#allocation7], %s1045_s22, %s1045_s22, %s1046_s23  }
  0x13   :  { %s1047_s26 = smov [#allocation3]   ;;  %s972_s30 = scalar_lea.hbm %s1141_s0, 256 }
  0x14   :  { %s16_s27 = sshll.u32 %s1047_s26, 4  ;;  %p973_p8 = scmp.ne.s32.totalorder %s1141_s0, %s972_s30  ;;  %s17_s27 = int_to_ptr.vmem [resolvable:$true] %s16_s27 }
  0x15   :  { %p976_p9 = scmp.lt.u32.totalorder %s972_s30, %s1141_s0 }
  0x17   :  { %p978_p10 = pnand %p976_p9, %p973_p8 }
  0x19   :  { %981 = shalt.err (!%p978_p10)
}
  0x1a   :  { %s982_s8 = scalar_lea.vmem %s17_s27, 256  ;;  %p987_p12 = scmp.lt.s32.totalorder %s17_s27, %s17_s27 }
  0x1b   :  { %p983_p11 = scmp.ne.s32.totalorder %s17_s27, %s982_s8  ;;  %p988_p13 = scmp.lt.s32.totalorder %s982_s8, %s982_s8 }
  0x1d   :  { %p989_p0 = por %p988_p13, %p987_p12 }
  0x1f   :  { %p990_p1 = pnand %p989_p0, %p983_p11 }
  0x21   :  { %993 = shalt.err (!%p990_p1)
}
  0x22   :  { %s1048_s1 = smov 128   ;;  %s1049_s9 = smov 8  }
  0x23   :  { %22 = dma.hbm_to_vmem [thread:$0]  %s1141_s0, 256, %s17_s27, [#allocation4], %s1048_s1, %s1048_s1, %s1049_s9  }
  0x24   :  { %s1050_s12 = smov [#allocation8]   ;;  %s994_s16 = scalar_lea.hbm %s1143_s2, 6144 }
  0x25   :  { %s40_s13 = sshll.u32 %s1050_s12, 4  ;;  %p995_p2 = scmp.ne.s32.totalorder %s1143_s2, %s994_s16  ;;  %s41_s13 = int_to_ptr.vmem [resolvable:$true] %s40_s13 }
  0x26   :  { %p998_p3 = scmp.lt.u32.totalorder %s994_s16, %s1143_s2 }
  0x28   :  { %p1000_p4 = pnand %p998_p3, %p995_p2 }
  0x2a   :  { %1003 = shalt.err (!%p1000_p4)
}
  0x2b   :  { %s1004_s21 = scalar_lea.vmem %s41_s13, 6144  ;;  %p1009_p6 = scmp.lt.s32.totalorder %s41_s13, %s41_s13 }
  0x2c   :  { %p1005_p5 = scmp.ne.s32.totalorder %s41_s13, %s1004_s21  ;;  %p1010_p7 = scmp.lt.s32.totalorder %s1004_s21, %s1004_s21 }
  0x2e   :  { %p1011_p8 = por %p1010_p7, %p1009_p6 }
  0x30   :  { %p1012_p9 = pnand %p1011_p8, %p1005_p5 }
  0x32   :  { %1015 = shalt.err (!%p1012_p9)
}
  0x33   :  { %46 = dma.hbm_to_vmem [thread:$0]  %s1143_s2, 6144, %s41_s13, [#allocation7], %s1048_s1, %s1048_s1, %s1049_s9  }
  0x34   :  { %1038 = dma.done.wait [#allocation4], 256  }
  0x35   :  { %1039 = vsyncadd [#allocation4], 4294967040 }
  0x36   :  { %1040 = dma.done.wait [#allocation7], 18432  }
  0x37   :  { %1041 = vsyncadd [#allocation7], 4294948864  ;;  %v1051_v0 = vmov 0.0   ;;  %v59_v1 = vld [vmem:[#allocation6 + $0x8] sm:$0xff]  ;;  %v65_v2 = vld [vmem:[#allocation6 + $0x38] sm:$0xff]  ;;  %s1052_s2 = smov [#allocation9]  }
  0x38   :  { %218 = vmatprep.mubr.f32.mxu0 %v1051_v0  ;;  %295 = vmatprep.mubr.f32.mxu1 %v1051_v0  ;;  %v61_v3 = vld [vmem:[#allocation6 + $0x18] sm:$0xff]  ;;  %v757_v4 = vpack.c.bf16 %v65_v2, %v59_v1  ;;  %v67_v5 = vld [vmem:[#allocation6 + $0x48] sm:$0xff]  ;;  %v58_v6 = vld [vmem:[#allocation6] sm:$0xff]  ;;  %s653_s23 = sshll.u32 %s1052_s2, 4  ;;  %s654_s23 = int_to_ptr.vmem [resolvable:$true] %s653_s23 }
  0x39   :  { %v64_v7 = vld [vmem:[#allocation6 + $0x30] sm:$0xff]  ;;  %v789_v8 = vpack.c.bf16 %v67_v5, %v61_v3  ;;  %v66_v11 = vld [vmem:[#allocation6 + $0x40] sm:$0xff]  ;;  %v71_v12 = vld [vmem:[#allocation6 + $0x68] sm:$0xff]  ;;  %s1016_s24 = scalar_lea.vmem %s654_s23, 256  ;;  %p1021_p11 = scmp.lt.s32.totalorder %s654_s23, %s654_s23 }
  0x3a   :  { %v759_v9 = vpack.c.bf16 %v64_v7, %v58_v6  ;;  %v60_v10 = vld [vmem:[#allocation6 + $0x10] sm:$0xff]  ;;  %758 = vmatprep.subr.bf16.mxu0 %v757_v4  ;;  %v77_v14 = vld [vmem:[#allocation6 + $0x98] sm:$0xff]  ;;  %v79_v16 = vld [vmem:[#allocation6 + $0xa8] sm:$0xff]  ;;  %p1017_p10 = scmp.ne.s32.totalorder %s654_s23, %s1016_s24  ;;  %p1022_p12 = scmp.lt.s32.totalorder %s1016_s24, %s1016_s24 }
  0x3b   :  { %v791_v13 = vpack.c.bf16 %v66_v11, %v60_v10  ;;  %v73_v15 = vld [vmem:[#allocation6 + $0x78] sm:$0xff]  ;;  %790 = vmatprep.subr.bf16.mxu1 %v789_v8  ;;  %v761_v17 = vpack.c.bf16 %v77_v14, %v71_v12  ;;  %v70_v19 = vld [vmem:[#allocation6 + $0x60] sm:$0xff]  ;;  %v76_v20 = vld [vmem:[#allocation6 + $0x90] sm:$0xff] }
  0x3c   :  { %760 = vmatpush1.bf16.msra.mxu0 %v759_v9  ;;  %v793_v18 = vpack.c.bf16 %v79_v16, %v73_v15  ;;  %v72_v21 = vld [vmem:[#allocation6 + $0x70] sm:$0xff]  ;;  %v763_v22 = vpack.c.bf16 %v76_v20, %v70_v19  ;;  %v78_v23 = vld [vmem:[#allocation6 + $0xa0] sm:$0xff]  ;;  %v83_v24 = vld [vmem:[#allocation6 + $0xc8] sm:$0xff]  ;;  %p1023_p13 = por %p1022_p12, %p1021_p11 }
  0x3d   :  { %792 = vmatpush1.bf16.msra.mxu1 %v791_v13  ;;  %v89_v25 = vld [vmem:[#allocation6 + $0xf8] sm:$0xff]  ;;  %762 = vmatprep.subr.bf16.mxu0 %v761_v17  ;;  %v795_v26 = vpack.c.bf16 %v78_v23, %v72_v21  ;;  %v91_v29 = vld [vmem:[#allocation6 + $0x108] sm:$0xff]  ;;  %v82_v30 = vld [vmem:[#allocation6 + $0xc0] sm:$0xff] }
  0x3e   :  { %794 = vmatprep.subr.bf16.mxu1 %v793_v18  ;;  %v765_v27 = vpack.c.bf16 %v89_v25, %v83_v24  ;;  %v85_v28 = vld [vmem:[#allocation6 + $0xd8] sm:$0xff]  ;;  %v88_v32 = vld [vmem:[#allocation6 + $0xf0] sm:$0xff]  ;;  %v90_v34 = vld [vmem:[#allocation6 + $0x100] sm:$0xff]  ;;  %p1024_p0 = pnand %p1023_p13, %p1017_p10 }
  0x3f   :  { %v797_v31 = vpack.c.bf16 %v91_v29, %v85_v28  ;;  %v84_v33 = vld [vmem:[#allocation6 + $0xd0] sm:$0xff]  ;;  %v767_v35 = vpack.c.bf16 %v88_v32, %v82_v30  ;;  %v95_v36 = vld [vmem:[#allocation6 + $0x128] sm:$0xff]  ;;  %v101_v37 = vld [vmem:[#allocation6 + $0x158] sm:$0xff] }
  0x40   :  { %764 = vmatpush1.bf16.msra.mxu0 %v763_v22  ;;  %v97_v38 = vld [vmem:[#allocation6 + $0x138] sm:$0xff]  ;;  %v799_v39 = vpack.c.bf16 %v90_v34, %v84_v33  ;;  %v769_v40 = vpack.c.bf16 %v101_v37, %v95_v36  ;;  %v103_v41 = vld [vmem:[#allocation6 + $0x168] sm:$0xff]  ;;  %v94_v42 = vld [vmem:[#allocation6 + $0x120] sm:$0xff] }
  0x41   :  { %796 = vmatpush1.bf16.msra.mxu1 %v795_v26  ;;  %766 = vmatprep.subr.bf16.mxu0 %v765_v27  ;;  %v100_v43 = vld [vmem:[#allocation6 + $0x150] sm:$0xff]  ;;  %v801_v44 = vpack.c.bf16 %v103_v41, %v97_v38  ;;  %v102_v46 = vld [vmem:[#allocation6 + $0x160] sm:$0xff]  ;;  %v107_v47 = vld [vmem:[#allocation6 + $0x188] sm:$0xff] }
  0x42   :  { %798 = vmatprep.subr.bf16.mxu1 %v797_v31  ;;  %v96_v45 = vld [vmem:[#allocation6 + $0x130] sm:$0xff]  ;;  %v113_v48 = vld [vmem:[#allocation6 + $0x1b8] sm:$0xff]  ;;  %v115_v50 = vld [vmem:[#allocation6 + $0x1c8] sm:$0xff]  ;;  %v771_v51 = vpack.c.bf16 %v100_v43, %v94_v42 }
  0x43   :  { %v109_v49 = vld [vmem:[#allocation6 + $0x198] sm:$0xff]  ;;  %v803_v52 = vpack.c.bf16 %v102_v46, %v96_v45  ;;  %v773_v53 = vpack.c.bf16 %v113_v48, %v107_v47  ;;  %v106_v54 = vld [vmem:[#allocation6 + $0x180] sm:$0xff]  ;;  %v112_v55 = vld [vmem:[#allocation6 + $0x1b0] sm:$0xff] }
  0x44   :  { %768 = vmatpush1.bf16.msra.mxu0 %v767_v35  ;;  %v108_v56 = vld [vmem:[#allocation6 + $0x190] sm:$0xff]  ;;  %v805_v57 = vpack.c.bf16 %v115_v50, %v109_v49  ;;  %v114_v58 = vld [vmem:[#allocation6 + $0x1c0] sm:$0xff]  ;;  %v119_v59 = vld [vmem:[#allocation6 + $0x1e8] sm:$0xff]  ;;  %v775_v63 = vpack.c.bf16 %v112_v55, %v106_v54 }
  0x45   :  { %800 = vmatpush1.bf16.msra.mxu1 %v799_v39  ;;  %770 = vmatprep.subr.bf16.mxu0 %v769_v40  ;;  %v125_v60 = vld [vmem:[#allocation6 + $0x218] sm:$0xff]  ;;  %v127_v62 = vld [vmem:[#allocation6 + $0x228] sm:$0xff]  ;;  %v807_v1 = vpack.c.bf16 %v114_v58, %v108_v56  ;;  %v118_v3 = vld [vmem:[#allocation6 + $0x1e0] sm:$0xff] }
  0x46   :  { %802 = vmatprep.subr.bf16.mxu1 %v801_v44  ;;  %v121_v61 = vld [vmem:[#allocation6 + $0x1f8] sm:$0xff]  ;;  %v777_v2 = vpack.c.bf16 %v125_v60, %v119_v59  ;;  %v124_v4 = vld [vmem:[#allocation6 + $0x210] sm:$0xff]  ;;  %v126_v7 = vld [vmem:[#allocation6 + $0x220] sm:$0xff] }
  0x47   :  { %v120_v5 = vld [vmem:[#allocation6 + $0x1f0] sm:$0xff]  ;;  %v809_v6 = vpack.c.bf16 %v127_v62, %v121_v61  ;;  %v131_v8 = vld [vmem:[#allocation6 + $0x248] sm:$0xff]  ;;  %v137_v9 = vld [vmem:[#allocation6 + $0x278] sm:$0xff]  ;;  %v779_v12 = vpack.c.bf16 %v124_v4, %v118_v3 }
  0x48   :  { %772 = vmatpush1.bf16.msra.mxu0 %v771_v51  ;;  %v133_v10 = vld [vmem:[#allocation6 + $0x258] sm:$0xff]  ;;  %v139_v11 = vld [vmem:[#allocation6 + $0x288] sm:$0xff]  ;;  %v811_v13 = vpack.c.bf16 %v126_v7, %v120_v5  ;;  %v781_v14 = vpack.c.bf16 %v137_v9, %v131_v8  ;;  %v130_v15 = vld [vmem:[#allocation6 + $0x240] sm:$0xff] }
  0x49   :  { %804 = vmatpush1.bf16.msra.mxu1 %v803_v52  ;;  %774 = vmatprep.subr.bf16.mxu0 %v773_v53  ;;  %v136_v16 = vld [vmem:[#allocation6 + $0x270] sm:$0xff]  ;;  %v813_v18 = vpack.c.bf16 %v139_v11, %v133_v10  ;;  %v138_v19 = vld [vmem:[#allocation6 + $0x280] sm:$0xff]  ;;  %v143_v20 = vld [vmem:[#allocation6 + $0x2a8] sm:$0xff] }
  0x4a   :  { %806 = vmatprep.subr.bf16.mxu1 %v805_v57  ;;  %v132_v17 = vld [vmem:[#allocation6 + $0x250] sm:$0xff]  ;;  %v149_v21 = vld [vmem:[#allocation6 + $0x2d8] sm:$0xff]  ;;  %v151_v23 = vld [vmem:[#allocation6 + $0x2e8] sm:$0xff]  ;;  %v783_v24 = vpack.c.bf16 %v136_v16, %v130_v15 }
  0x4b   :  { %v145_v22 = vld [vmem:[#allocation6 + $0x2b8] sm:$0xff]  ;;  %v815_v25 = vpack.c.bf16 %v138_v19, %v132_v17  ;;  %v785_v26 = vpack.c.bf16 %v149_v21, %v143_v20  ;;  %v142_v27 = vld [vmem:[#allocation6 + $0x2a0] sm:$0xff]  ;;  %v148_v28 = vld [vmem:[#allocation6 + $0x2d0] sm:$0xff] }
  0x4c   :  { %776 = vmatpush1.bf16.msra.mxu0 %v775_v63  ;;  %v144_v29 = vld [vmem:[#allocation6 + $0x2b0] sm:$0xff]  ;;  %v817_v30 = vpack.c.bf16 %v151_v23, %v145_v22  ;;  %v150_v31 = vld [vmem:[#allocation6 + $0x2e0] sm:$0xff]  ;;  %v63_v32 = vld [vmem:[#allocation6 + $0x28] sm:$0xff]  ;;  %v787_v34 = vpack.c.bf16 %v148_v28, %v142_v27 }
  0x4d   :  { %808 = vmatpush1.bf16.msra.mxu1 %v807_v1  ;;  %778 = vmatprep.subr.bf16.mxu0 %v777_v2  ;;  %v69_v33 = vld [vmem:[#allocation6 + $0x58] sm:$0xff]  ;;  %v819_v35 = vpack.c.bf16 %v150_v31, %v144_v29  ;;  %v62_v37 = vld [vmem:[#allocation6 + $0x20] sm:$0xff]  ;;  %v68_v38 = vld [vmem:[#allocation6 + $0x50] sm:$0xff] }
  0x4e   :  { %810 = vmatprep.subr.bf16.mxu1 %v809_v6  ;;  %v821_v36 = vpack.c.bf16 %v69_v33, %v63_v32  ;;  %v75_v39 = vld [vmem:[#allocation6 + $0x88] sm:$0xff]  ;;  %v81_v40 = vld [vmem:[#allocation6 + $0xb8] sm:$0xff]  ;;  %v1117_v41 = vld [vmem:[#allocation3] sm:$0xff]  ;;  %v823_v42 = vpack.c.bf16 %v68_v38, %v62_v37 }
  0x4f   :  { %v74_v43 = vld [vmem:[#allocation6 + $0x80] sm:$0xff]  ;;  %v80_v44 = vld [vmem:[#allocation6 + $0xb0] sm:$0xff]  ;;  %v825_v45 = vpack.c.bf16 %v81_v40, %v75_v39  ;;  %v87_v46 = vld [vmem:[#allocation6 + $0xe8] sm:$0xff] }
  0x50   :  { %780 = vmatpush1.bf16.msra.mxu0 %v779_v12  ;;  %v93_v47 = vld [vmem:[#allocation6 + $0x118] sm:$0xff]  ;;  %v827_v49 = vpack.c.bf16 %v80_v44, %v74_v43  ;;  %v86_v51 = vld [vmem:[#allocation6 + $0xe0] sm:$0xff]  ;;  %v92_v52 = vld [vmem:[#allocation6 + $0x110] sm:$0xff] }
  0x51   :  { %812 = vmatpush1.bf16.msra.mxu1 %v811_v13  ;;  %782 = vmatprep.subr.bf16.mxu0 %v781_v14  ;;  %v57_v48 = vld [vmem:[#allocation3 + $0x8] sm:$0xff]  ;;  %v829_v50 = vpack.c.bf16 %v93_v47, %v87_v46  ;;  %v99_v53 = vld [vmem:[#allocation6 + $0x148] sm:$0xff]  ;;  %v831_v55 = vpack.c.bf16 %v92_v52, %v86_v51  ;;  %v98_v57 = vld [vmem:[#allocation6 + $0x140] sm:$0xff] }
  0x52   :  { %814 = vmatprep.subr.bf16.mxu1 %v813_v18  ;;  %v105_v54 = vld [vmem:[#allocation6 + $0x178] sm:$0xff]  ;;  %v104_v58 = vld [vmem:[#allocation6 + $0x170] sm:$0xff]  ;;  %v111_v59 = vld [vmem:[#allocation6 + $0x1a8] sm:$0xff] }
  0x53   :  { %v833_v56 = vpack.c.bf16 %v105_v54, %v99_v53  ;;  %v117_v60 = vld [vmem:[#allocation6 + $0x1d8] sm:$0xff]  ;;  %v835_v61 = vpack.c.bf16 %v104_v58, %v98_v57  ;;  %v110_v63 = vld [vmem:[#allocation6 + $0x1a0] sm:$0xff]  ;;  %v116_v1 = vld [vmem:[#allocation6 + $0x1d0] sm:$0xff] }
  0x54   :  { %784 = vmatpush1.bf16.msra.mxu0 %v783_v24  ;;  %v837_v62 = vpack.c.bf16 %v117_v60, %v111_v59  ;;  %v123_v2 = vld [vmem:[#allocation6 + $0x208] sm:$0xff]  ;;  %v129_v3 = vld [vmem:[#allocation6 + $0x238] sm:$0xff]  ;;  %v839_v4 = vpack.c.bf16 %v116_v1, %v110_v63  ;;  %v122_v6 = vld [vmem:[#allocation6 + $0x200] sm:$0xff] }
  0x55   :  { %816 = vmatpush1.bf16.msra.mxu1 %v815_v25  ;;  %786 = vmatprep.subr.bf16.mxu0 %v785_v26  ;;  %v841_v5 = vpack.c.bf16 %v129_v3, %v123_v2  ;;  %v128_v7 = vld [vmem:[#allocation6 + $0x230] sm:$0xff]  ;;  %v135_v8 = vld [vmem:[#allocation6 + $0x268] sm:$0xff]  ;;  %v141_v9 = vld [vmem:[#allocation6 + $0x298] sm:$0xff] }
  0x56   :  { %818 = vmatprep.subr.bf16.mxu1 %v817_v30  ;;  %v843_v10 = vpack.c.bf16 %v128_v7, %v122_v6  ;;  %v845_v11 = vpack.c.bf16 %v141_v9, %v135_v8  ;;  %v134_v12 = vld [vmem:[#allocation6 + $0x260] sm:$0xff]  ;;  %v140_v13 = vld [vmem:[#allocation6 + $0x290] sm:$0xff]  ;;  %v147_v14 = vld [vmem:[#allocation6 + $0x2c8] sm:$0xff] }
  0x57   :  { %v153_v15 = vld [vmem:[#allocation6 + $0x2f8] sm:$0xff]  ;;  %v847_v16 = vpack.c.bf16 %v140_v13, %v134_v12  ;;  %v146_v18 = vld [vmem:[#allocation6 + $0x2c0] sm:$0xff]  ;;  %v152_v19 = vld [vmem:[#allocation6 + $0x2f0] sm:$0xff] }
  0x58   :  { %788 = vmatpush1.bf16.msra.mxu0 %v787_v34  ;;  %v849_v17 = vpack.c.bf16 %v153_v15, %v147_v14  ;;  %v851_v20 = vpack.c.bf16 %v152_v19, %v146_v18  ;;  %v443_v21 = vld [vmem:[#allocation8 + $0x80] sm:$0xff]  ;;  %v444_v22 = vld [vmem:[#allocation8 + $0x88] sm:$0xff]  ;;  %v445_v27 = vld [vmem:[#allocation8 + $0x90] sm:$0xff] }
  0x59   :  { %820 = vmatpush1.bf16.msra.mxu1 %v819_v35  ;;  %822 = vmatprep.subr.bf16.mxu0 %v821_v36  ;;  %v853_v23 = vpack.c.bf16 %v444_v22, %v443_v21  ;;  %v427_v24 = vld [vmem:[#allocation8] sm:$0xff]  ;;  %v428_v25 = vld [vmem:[#allocation8 + $0x8] sm:$0xff]  ;;  %v446_v28 = vld [vmem:[#allocation8 + $0x98] sm:$0xff] }
  0x5a   :  { %v855_v26 = vpack.c.bf16 %v428_v25, %v427_v24  ;;  %v459_v29 = vld [vmem:[#allocation8 + $0x100] sm:$0xff]  ;;  %v857_v30 = vpack.c.bf16 %v446_v28, %v445_v27  ;;  %v460_v31 = vld [vmem:[#allocation8 + $0x108] sm:$0xff]  ;;  %v429_v32 = vld [vmem:[#allocation8 + $0x10] sm:$0xff] }
  0x5b   :  { %219 = vmatmul.mubr.f32.vlgmr.msra.gmra.mrb[0].mxu0 %v1117_v41  ;;  %854 = vmatprep.subr.bf16.mxu1 %v853_v23  ;;  %v430_v33 = vld [vmem:[#allocation8 + $0x18] sm:$0xff]  ;;  %v885_v34 = vpack.c.bf16 %v460_v31, %v459_v29  ;;  %v448_v36 = vld [vmem:[#allocation8 + $0xa8] sm:$0xff]  ;;  %v461_v37 = vld [vmem:[#allocation8 + $0x110] sm:$0xff] }
  0x5c   :  { %296 = vmatmul.mubr.f32.vlgmr.msra.gmra.mrb[0].mxu1 %v1117_v41  ;;  %824 = vmatpush1.bf16.msra.mxu0 %v823_v42  ;;  %v859_v35 = vpack.c.bf16 %v430_v33, %v429_v32  ;;  %v462_v39 = vld [vmem:[#allocation8 + $0x118] sm:$0xff]  ;;  %v431_v40 = vld [vmem:[#allocation8 + $0x20] sm:$0xff]  ;;  %v449_v44 = vld [vmem:[#allocation8 + $0xb0] sm:$0xff] }
  0x5d   :  { %224 = vmatprep.mubr.f32.mxu0 %v1051_v0  ;;  %301 = vmatprep.mubr.f32.mxu1 %v1051_v0  ;;  %v889_v42 = vpack.c.bf16 %v462_v39, %v461_v37  ;;  %v463_v46 = vld [vmem:[#allocation8 + $0x120] sm:$0xff]  ;;  %v452_v54 = vld [vmem:[#allocation8 + $0xc8] sm:$0xff]  ;;  %v466_v57 = vld [vmem:[#allocation8 + $0x138] sm:$0xff] }
  0x5e   :  { %826 = vmatprep.subr.bf16.mxu0 %v825_v45  ;;  %856 = vmatpush3.bf16.msra.mxu1 %v855_v26  ;;  %v450_v45 = vld [vmem:[#allocation8 + $0xb8] sm:$0xff]  ;;  %v451_v53 = vld [vmem:[#allocation8 + $0xc0] sm:$0xff]  ;;  %v436_v59 = vld [vmem:[#allocation8 + $0x48] sm:$0xff] }
  0x5f   :  { %225 = vmatmul.mubr.f32.gmra.mrb[2].mxu0 %v57_v48  ;;  %858 = vmatprep.subr.bf16.mxu1 %v857_v30  ;;  %v865_v47 = vpack.c.bf16 %v450_v45, %v449_v44  ;;  %v435_v58 = vld [vmem:[#allocation8 + $0x40] sm:$0xff]  ;;  %v454_v63 = vld [vmem:[#allocation8 + $0xd8] sm:$0xff]  ;;  %v468_v3 = vld [vmem:[#allocation8 + $0x148] sm:$0xff] }
  0x60   :  { %302 = vmatmul.mubr.f32.gmra.mrb[2].mxu1 %v57_v48  ;;  %828 = vmatpush1.bf16.msra.mxu0 %v827_v49  ;;  %v433_v49 = vld [vmem:[#allocation8 + $0x30] sm:$0xff]  ;;  %v467_v1 = vld [vmem:[#allocation8 + $0x140] sm:$0xff]  ;;  %v456_v9 = vld [vmem:[#allocation8 + $0xe8] sm:$0xff] }
  0x61   :  { %830 = vmatprep.subr.bf16.mxu0 %v829_v50  ;;  %372 = vmatprep.mubr.f32.mxu0 %v1051_v0  ;;  %v434_v50 = vld [vmem:[#allocation8 + $0x38] sm:$0xff]  ;;  %v901_v6 = vpack.c.bf16 %v468_v3, %v467_v1  ;;  %v455_v8 = vld [vmem:[#allocation8 + $0xe0] sm:$0xff]  ;;  %v440_v14 = vld [vmem:[#allocation8 + $0x68] sm:$0xff] }
  0x62   :  { %860 = vmatpush3.bf16.msra.mxu1 %v859_v35  ;;  %v867_v52 = vpack.c.bf16 %v434_v50, %v433_v49  ;;  %v470_v12 = vld [vmem:[#allocation8 + $0x158] sm:$0xff]  ;;  %v439_v13 = vld [vmem:[#allocation8 + $0x60] sm:$0xff]  ;;  %v472_v21 = vld [vmem:[#allocation8 + $0x168] sm:$0xff] }
  0x63   :  { %v458_v18 = vld [vmem:[#allocation8 + $0xf8] sm:$0xff]  ;;  %v471_v19 = vld [vmem:[#allocation8 + $0x160] sm:$0xff]  ;;  %v441_v22 = vld [vmem:[#allocation8 + $0x70] sm:$0xff] }
  0x64   :  { %832 = vmatpush1.bf16.msra.mxu0 %v831_v55  ;;  %v465_v55 = vld [vmem:[#allocation8 + $0x130] sm:$0xff]  ;;  %v442_v23 = vld [vmem:[#allocation8 + $0x78] sm:$0xff]  ;;  %v909_v24 = vpack.c.bf16 %v472_v21, %v471_v19 }
  0x65   :  { %834 = vmatprep.subr.bf16.mxu0 %v833_v56  ;;  %v869_v56 = vpack.c.bf16 %v452_v54, %v451_v53  ;;  %v897_v60 = vpack.c.bf16 %v466_v57, %v465_v55  ;;  %v883_v25 = vpack.c.bf16 %v442_v23, %v441_v22  ;;  %v473_v26 = vld [vmem:[#allocation8 + $0x170] sm:$0xff]  ;;  %v474_v27 = vld [vmem:[#allocation8 + $0x178] sm:$0xff] }
  0x66   :  { %v913_v28 = vpack.c.bf16 %v474_v27, %v473_v26 }
  0x68   :  { %836 = vmatpush1.bf16.msra.mxu0 %v835_v61  ;;  %v871_v61 = vpack.c.bf16 %v436_v59, %v435_v58 }
  0x69   :  { %838 = vmatprep.subr.bf16.mxu0 %v837_v62  ;;  %v453_v62 = vld [vmem:[#allocation8 + $0xd0] sm:$0xff] }
  0x6a   :  { %v873_v2 = vpack.c.bf16 %v454_v63, %v453_v62 }
  0x6c   :  { %840 = vmatpush1.bf16.msra.mxu0 %v839_v4  ;;  %v437_v4 = vld [vmem:[#allocation8 + $0x50] sm:$0xff] }
  0x6d   :  { %842 = vmatprep.subr.bf16.mxu0 %v841_v5  ;;  %v438_v5 = vld [vmem:[#allocation8 + $0x58] sm:$0xff] }
  0x6e   :  { %v875_v7 = vpack.c.bf16 %v438_v5, %v437_v4 }
  0x70   :  { %844 = vmatpush1.bf16.msra.mxu0 %v843_v10  ;;  %v469_v10 = vld [vmem:[#allocation8 + $0x150] sm:$0xff] }
  0x71   :  { %846 = vmatprep.subr.bf16.mxu0 %v845_v11  ;;  %v877_v11 = vpack.c.bf16 %v456_v9, %v455_v8  ;;  %v905_v15 = vpack.c.bf16 %v470_v12, %v469_v10 }
  0x74   :  { %848 = vmatpush1.bf16.msra.mxu0 %v847_v16  ;;  %v879_v16 = vpack.c.bf16 %v440_v14, %v439_v13 }
  0x75   :  { %850 = vmatprep.subr.bf16.mxu0 %v849_v17  ;;  %v457_v17 = vld [vmem:[#allocation8 + $0xf0] sm:$0xff] }
  0x78   :  { %852 = vmatpush1.bf16.msra.mxu0 %v851_v20  ;;  %v881_v20 = vpack.c.bf16 %v458_v18, %v457_v17 }
  0x79   :  { %886 = vmatprep.subr.bf16.mxu0 %v885_v34 }
  0x7b   :  { %373 = vmatmul.mubr.f32.vlgmr.msra.gmra.mrb[4].mxu0 %v1117_v41  ;;  %v432_v41 = vld [vmem:[#allocation8 + $0x28] sm:$0xff] }
  0x7c   :  { %378 = vmatprep.mubr.f32.mxu0 %v1051_v0  ;;  %v447_v0 = vld [vmem:[#allocation8 + $0xa0] sm:$0xff]  ;;  %888 = vmatpush3.bf16.msra.mxu0 %v885_v34  ;;  %v863_v43 = vpack.c.bf16 %v432_v41, %v431_v40 }
  0x7d   :  { %v861_v38 = vpack.c.bf16 %v448_v36, %v447_v0  ;;  %890 = vmatprep.subr.bf16.mxu0 %v889_v42 }
  0x7f   :  { %379 = vmatmul.mubr.f32.gmra.mrb[6].mxu0 %v57_v48  ;;  %862 = vmatprep.subr.bf16.mxu1 %v861_v38  ;;  %v464_v48 = vld [vmem:[#allocation8 + $0x128] sm:$0xff] }
  0x80   :  { %864 = vmatpush3.bf16.msra.mxu1 %v863_v43  ;;  %892 = vmatpush3.bf16.msra.mxu0 %v889_v42  ;;  %v893_v51 = vpack.c.bf16 %v464_v48, %v463_v46 }
  0x81   :  { %866 = vmatprep.subr.bf16.mxu1 %v865_v47 }
  0x82   :  { %894 = vmatprep.subr.bf16.mxu0 %v893_v51 }
  0x84   :  { %868 = vmatpush3.bf16.msra.mxu1 %v867_v52  ;;  %896 = vmatpush3.bf16.msra.mxu0 %v893_v51 }
  0x85   :  { %870 = vmatprep.subr.bf16.mxu1 %v869_v56  ;;  %898 = vmatprep.subr.bf16.mxu0 %v897_v60 }
  0x88   :  { %872 = vmatpush3.bf16.msra.mxu1 %v871_v61  ;;  %900 = vmatpush3.bf16.msra.mxu0 %v897_v60 }
  0x89   :  { %874 = vmatprep.subr.bf16.mxu1 %v873_v2  ;;  %902 = vmatprep.subr.bf16.mxu0 %v901_v6 }
  0x8c   :  { %876 = vmatpush3.bf16.msra.mxu1 %v875_v7  ;;  %904 = vmatpush3.bf16.msra.mxu0 %v901_v6 }
  0x8d   :  { %878 = vmatprep.subr.bf16.mxu1 %v877_v11  ;;  %906 = vmatprep.subr.bf16.mxu0 %v905_v15 }
  0x90   :  { %880 = vmatpush3.bf16.msra.mxu1 %v879_v16  ;;  %908 = vmatpush3.bf16.msra.mxu0 %v905_v15 }
  0x91   :  { %882 = vmatprep.subr.bf16.mxu1 %v881_v20  ;;  %910 = vmatprep.subr.bf16.mxu0 %v909_v24 }
  0x94   :  { %884 = vmatpush3.bf16.msra.mxu1 %v883_v25  ;;  %912 = vmatpush3.bf16.msra.mxu0 %v909_v24 }
  0x95   :  { %914 = vmatprep.subr.bf16.mxu0 %v913_v28 }
  0x98   :  { %916 = vmatpush3.bf16.msra.mxu0 %v913_v28 }
 0x12e   :  { %v220_v29 = vpop.f32.mrb[0].mxu0 }
 0x12f   :  { %v385_v30 = vsub.f32 0.0, %v220_v29  ;;  %v297_v31 = vpop.f32.mrb[0].mxu1  ;;  %v222_v32 = vpop.f32.mrb[1].mxu0 }
 0x130   :  { %v387_v33 = vsub.f32 0.0, %v297_v31  ;;  %v386_v34 = vsub.f32 0.0, %v222_v32  ;;  %v299_v35 = vpop.f32.mrb[1].mxu1 }
 0x131   :  { %v391_v0 = vmul.f32 1.442695, %v385_v30 }
 0x132   :  { %v395_v36 = vmul.f32 1.442695, %v387_v33  ;;  %v393_v37 = vmul.f32 1.442695, %v386_v34  ;;  %v226_v38 = vpop.f32.mrb[2].mxu0 }
 0x133   :  { %926 = vpow2.f32 %v391_v0  ;;  %v388_v39 = vsub.f32 0.0, %v226_v38  ;;  %v303_v40 = vpop.f32.mrb[2].mxu1  ;;  %v228_v41 = vpop.f32.mrb[3].mxu0 }
 0x134   :  { %928 = vpow2.f32 %v395_v36  ;;  %v390_v42 = vsub.f32 0.0, %v303_v40  ;;  %v389_v43 = vsub.f32 0.0, %v228_v41  ;;  %v305_v44 = vpop.f32.mrb[3].mxu1 }
 0x135   :  { %930 = vpow2.f32 %v393_v37  ;;  %v397_v45 = vmul.f32 1.442695, %v388_v39 }
 0x136   :  { %v401_v46 = vmul.f32 1.442695, %v390_v42  ;;  %v399_v47 = vmul.f32 1.442695, %v389_v43 }
 0x137   :  { %932 = vpow2.f32 %v397_v45 }
 0x138   :  { %934 = vpow2.f32 %v401_v46 }
 0x139   :  { %936 = vpow2.f32 %v399_v47 }
 0x13d   :  { %v927_v48 = vpop.eup %926 }
 0x13e   :  { %v929_v49 = vpop.eup %928  ;;  %v403_v50 = vadd.f32 1.0, %v927_v48 }
 0x13f   :  { %v931_v51 = vpop.eup %930  ;;  %v405_v52 = vadd.f32 1.0, %v929_v49 }
 0x140   :  { %938 = vrcp.f32 %v403_v50  ;;  %v404_v53 = vadd.f32 1.0, %v931_v51 }
 0x141   :  { %v933_v54 = vpop.eup %932  ;;  %940 = vrcp.f32 %v405_v52 }
 0x142   :  { %v935_v55 = vpop.eup %934  ;;  %942 = vrcp.f32 %v404_v53  ;;  %v406_v56 = vadd.f32 1.0, %v933_v54 }
 0x143   :  { %v937_v57 = vpop.eup %936  ;;  %v408_v58 = vadd.f32 1.0, %v935_v55 }
 0x144   :  { %944 = vrcp.f32 %v406_v56  ;;  %v407_v59 = vadd.f32 1.0, %v937_v57 }
 0x145   :  { %946 = vrcp.f32 %v408_v58 }
 0x146   :  { %948 = vrcp.f32 %v407_v59 }
 0x14a   :  { %v939_v60 = vpop.eup %938 }
 0x14b   :  { %v941_v61 = vpop.eup %940  ;;  %v415_v62 = vmul.f32 %v939_v60, %v220_v29 }
 0x14c   :  { %v943_v63 = vpop.eup %942  ;;  %v417_v4 = vmul.f32 %v941_v61, %v297_v31 }
 0x14d   :  { %v416_v1 = vmul.f32 %v943_v63, %v222_v32  ;;  %v421_v2 = vmul.f32 %v415_v62, %v299_v35 }
 0x14e   :  { %v945_v3 = vpop.eup %944  ;;  %v374_v5 = vpop.f32.mrb[4].mxu0 }
 0x14f   :  { %v947_v6 = vpop.eup %946  ;;  %v418_v7 = vmul.f32 %v945_v3, %v226_v38  ;;  %v422_v8 = vmul.f32 %v416_v1, %v374_v5  ;;  %v376_v9 = vpop.f32.mrb[5].mxu0 }
 0x150   :  { %v949_v10 = vpop.eup %948  ;;  %v423_v11 = vmul.f32 %v417_v4, %v376_v9  ;;  %v420_v14 = vmul.f32 %v947_v6, %v303_v40 }
 0x151   :  { %v419_v12 = vmul.f32 %v949_v10, %v228_v41  ;;  %v424_v13 = vmul.f32 %v418_v7, %v305_v44  ;;  %539 = vmatprep.mubr.f32.mxu1 %v422_v8 }
 0x152   :  { %v380_v15 = vpop.f32.mrb[6].mxu0  ;;  %540 = vmatmul.mubr.f32.vlgmr.msra.gmra.mrb[4].mxu1 %v421_v2  ;;  %754 = vmatprep.mubr.f32.mxu0 %v423_v11 }
 0x153   :  { %v425_v16 = vmul.f32 %v419_v12, %v380_v15  ;;  %v382_v17 = vpop.f32.mrb[7].mxu0 }
 0x154   :  { %v426_v18 = vmul.f32 %v420_v14, %v382_v17 }
 0x155   :  { %544 = vmatprep.mubr.f32.mxu1 %v425_v16 }
 0x156   :  { %545 = vmatmul.mubr.f32.gmra.mrb[6].mxu1 %v424_v13  ;;  %755 = vmatmul.mubr.f32.vlgmr.msra.gmra.mrb[8].mxu0 %v426_v18 }
 0x225   :  { %v698_v19 = vpop.f32.mrb[4].mxu1 }
 0x226   :  { %v699_v20 = vpop.f32.mrb[5].mxu1 }
 0x227   :  { %v700_v21 = vadd.f32 %v699_v20, %v698_v19 }
 0x229   :  { %v701_v22 = vpop.f32.mrb[6].mxu1  ;;  %v756_v23 = vpop.f32.mrb[8].mxu0 }
 0x22a   :  { %v702_v24 = vpop.f32.mrb[7].mxu1  ;;  %v616_v25 = vpop.f32.mrb[9].mxu0 }
 0x22b   :  { %v703_v26 = vadd.f32 %v702_v24, %v701_v22  ;;  %v617_v27 = vadd.f32 %v700_v21, %v616_v25 }
 0x22d   :  { %v622_v28 = vadd.f32 %v756_v23, %v703_v26  ;;  %646 = vst [vmem:[#allocation9] sm:$0xff] %v617_v27 }
 0x22f   :  { %647 = vst [vmem:[#allocation9 + $0x8] sm:$0xff] %v622_v28 }
 0x230   :  { %1027 = shalt.err (!%p1024_p0)
}
 0x231   :  { %s1028_s27 = scalar_lea.hbm %s1144_s3, 256 }
 0x232   :  { %p1029_p1 = scmp.ne.s32.totalorder %s1144_s3, %s1028_s27  ;;  %p1032_p2 = scmp.lt.u32.totalorder %s1028_s27, %s1144_s3 }
 0x234   :  { %p1034_p3 = pnand %p1032_p2, %p1029_p1 }
 0x236   :  { %1037 = shalt.err (!%p1034_p3)
}
 0x237   :  { %659 = dma.vmem_to_hbm [thread:$0]  %s654_s23, 256, %s1144_s3, [#allocation5], %s1048_s1, %s1048_s1, %s1049_s9  }
 0x238   :  { %1042 = dma.done.wait [#allocation5], 256  }
 0x239   :  { %1043 = vsyncadd [#allocation5], 4294967040 }
 0x23a   :  { %663 = vsyncpa [#allocation4], 1 }
 0x23b   :  { %664 = vsyncpa [#allocation7], 1 }
 0x23c   :  { %665 = vsyncpa [#allocation5], 1 }

</bundles_post_ra>
